<compile_context>
chip_gen: v7x
topology: tpu7x:2x2x1
jax: 0.10.0
libtpu: 0.0.40
codegen_flags: <defaults>
</compile_context>

<pallas_src>
import numpy as np
import jax
import jax.numpy as jnp
from jax.experimental import pallas as pl
from jax.experimental.pallas import tpu as pltpu


_EPS = 1e-5


def _fold_bn(bias, gamma, beta, mean, var, eps=_EPS):
    """Fold conv bias + inference BatchNorm into per-channel scale/shift."""
    scale = gamma / jnp.sqrt(var + eps)
    shift = scale * (bias - mean) + beta
    return scale, shift


def _up_kernel(x_ref, w_ref, scale_ref, shift_ref, alpha_ref, o_ref):
    # x:(1,Cin,S0)  w:(4*Cout,Cin)  scale/shift/alpha:(4*Cout,1)  o:(1,4*Cout,S0)
    x = x_ref[0].astype(jnp.float32)
    y = jnp.dot(w_ref[...], x, preferred_element_type=jnp.float32)
    y = y * scale_ref[...] + shift_ref[...]          # folded ConvT bias + BatchNorm
    y = jnp.where(y >= 0.0, y, alpha_ref[...] * y)   # PReLU (per channel)
    o_ref[0] = y.astype(o_ref.dtype)


def _head_kernel(xcol_ref, up_ref, w1_ref, s1_ref, b1_ref, a1_ref,
                 w2_ref, s2_ref, b2_ref, a2_ref, o_ref):
    # xcol:(1,9*Ccat,S)  up:(1,Cout,S)  w1:(Cout,9*Ccat)  w2:(classes,Cout)
    xcol = xcol_ref[0].astype(jnp.float32)
    # Conv3x3 (im2col GEMM) + BN + PReLU
    y = jnp.dot(w1_ref[...], xcol, preferred_element_type=jnp.float32)
    y = y * s1_ref[...] + b1_ref[...]
    y = jnp.where(y >= 0.0, y, a1_ref[...] * y)
    # residual add with the activated upsampled branch
    y = y + up_ref[0].astype(jnp.float32)
    # Conv1x1 + BN + PReLU
    z = jnp.dot(w2_ref[...], y, preferred_element_type=jnp.float32)
    z = z * s2_ref[...] + b2_ref[...]
    z = jnp.where(z >= 0.0, z, a2_ref[...] * z)
    o_ref[0] = z.astype(o_ref.dtype)


def net_out_block_forward(x, bridge, p):
    """NetOutBlock forward (inference BN). x:(N,Cin,H,W), bridge:(N,Cbr,2H,2W)."""
    N, C_in, H, W = x.shape
    C_out = p["w_up"].shape[1]
    C_br = bridge.shape[1]
    classes = p["w_out"].shape[0]
    C_cat = C_out + C_br
    H2, W2 = 2 * H, 2 * W
    S0, S = H * W, H2 * W2
    f32 = jnp.float32

    # -------- stage 1: ConvTranspose2d(k=2,s=2) + BN + PReLU (one MXU matmul) --------
    # row ordering (ki, kj, co): row = (ki*2 + kj)*C_out + co
    w_all = jnp.transpose(p["w_up"], (2, 3, 1, 0)).reshape(4 * C_out, C_in).astype(f32)
    sc, sh = _fold_bn(p["b_up"], p["g_up"], p["be_up"], p["m_up"], p["v_up"])
    sc4 = jnp.tile(sc, 4)[:, None].astype(f32)
    sh4 = jnp.tile(sh, 4)[:, None].astype(f32)
    a4 = jnp.tile(p["a_up"], 4)[:, None].astype(f32)

    xf = x.reshape(N, C_in, S0)
    bytes_a = 4 * (xf.size + w_all.size + 3 * sc4.size + N * 4 * C_out * S0)
    up4 = pl.pallas_call(
        _up_kernel,
        out_shape=jax.ShapeDtypeStruct((N, 4 * C_out, S0), x.dtype),
        grid_spec=pltpu.PrefetchScalarGridSpec(
            num_scalar_prefetch=0,
            grid=(N,),
            in_specs=[
                pl.BlockSpec((1, C_in, S0), lambda n: (n, 0, 0)),
                pl.BlockSpec((4 * C_out, C_in), lambda n: (0, 0)),
                pl.BlockSpec((4 * C_out, 1), lambda n: (0, 0)),
                pl.BlockSpec((4 * C_out, 1), lambda n: (0, 0)),
                pl.BlockSpec((4 * C_out, 1), lambda n: (0, 0)),
            ],
            out_specs=pl.BlockSpec((1, 4 * C_out, S0), lambda n: (n, 0, 0)),
        ),
        compiler_params=pltpu.CompilerParams(dimension_semantics=("parallel",)),
        cost_estimate=pl.CostEstimate(flops=2 * N * 4 * C_out * C_in * S0,
                                      transcendentals=0, bytes_accessed=bytes_a),
    )(xf, w_all, sc4, sh4, a4)

    # de-interleave the 4 (ki,kj) taps into the 2x-upsampled grid (wrapper layout glue)
    up = (up4.reshape(N, 2, 2, C_out, H, W)
              .transpose(0, 3, 4, 1, 5, 2)
              .reshape(N, C_out, H2, W2))

    # -------- stage 2: concat + Conv3x3 + BN + PReLU + add + Conv1x1 + BN + PReLU --------
    cat = jnp.concatenate([up, bridge], axis=1)                  # (N, C_cat, H2, W2)
    pad = jnp.pad(cat, ((0, 0), (0, 0), (1, 1), (1, 1)))
    cols = [pad[:, :, dy:dy + H2, dx:dx + W2] for dy in range(3) for dx in range(3)]
    xcol = jnp.stack(cols, axis=1).reshape(N, 9 * C_cat, S)       # tap-major im2col
    upf = up.reshape(N, C_out, S)

    w1 = jnp.transpose(p["w_cb"], (0, 2, 3, 1)).reshape(C_out, 9 * C_cat).astype(f32)
    s1, b1 = _fold_bn(p["b_cb"], p["g_cb"], p["be_cb"], p["m_cb"], p["v_cb"])
    w2 = p["w_out"].reshape(classes, C_out).astype(f32)
    s2, b2 = _fold_bn(p["b_out"], p["g_out"], p["be_out"], p["m_out"], p["v_out"])

    flops_b = 2 * N * S * (C_out * 9 * C_cat + classes * C_out)
    bytes_b = 4 * (xcol.size + upf.size + w1.size + w2.size + N * classes * S)
    out = pl.pallas_call(
        _head_kernel,
        out_shape=jax.ShapeDtypeStruct((N, classes, S), x.dtype),
        grid_spec=pltpu.PrefetchScalarGridSpec(
            num_scalar_prefetch=0,
            grid=(N,),
            in_specs=[
                pl.BlockSpec((1, 9 * C_cat, S), lambda n: (n, 0, 0)),
                pl.BlockSpec((1, C_out, S), lambda n: (n, 0, 0)),
                pl.BlockSpec((C_out, 9 * C_cat), lambda n: (0, 0)),
                pl.BlockSpec((C_out, 1), lambda n: (0, 0)),
                pl.BlockSpec((C_out, 1), lambda n: (0, 0)),
                pl.BlockSpec((C_out, 1), lambda n: (0, 0)),
                pl.BlockSpec((classes, C_out), lambda n: (0, 0)),
                pl.BlockSpec((classes, 1), lambda n: (0, 0)),
                pl.BlockSpec((classes, 1), lambda n: (0, 0)),
                pl.BlockSpec((classes, 1), lambda n: (0, 0)),
            ],
            out_specs=pl.BlockSpec((1, classes, S), lambda n: (n, 0, 0)),
        ),
        compiler_params=pltpu.CompilerParams(dimension_semantics=("parallel",)),
        cost_estimate=pl.CostEstimate(flops=flops_b, transcendentals=0,
                                      bytes_accessed=bytes_b),
    )(xcol, upf, w1,
      s1[:, None].astype(f32), b1[:, None].astype(f32), p["a_cb"][:, None].astype(f32),
      w2,
      s2[:, None].astype(f32), b2[:, None].astype(f32), p["a_out"][:, None].astype(f32))

    return out.reshape(N, classes, H2, W2)


def _init_params(key, in_channels, br_channels, out_channels, classes):
    ks = jax.random.split(key, 18)
    C_cat = out_channels + br_channels

    def nrm(k, shape, s=0.1):
        return s * jax.random.normal(k, shape, dtype=jnp.float32)

    def uni(k, shape, lo, hi):
        return jax.random.uniform(k, shape, jnp.float32, lo, hi)

    return dict(
        # ConvTranspose2d(in, out, k=2, s=2): weight (in, out, 2, 2)
        w_up=nrm(ks[0], (in_channels, out_channels, 2, 2)),
        b_up=nrm(ks[1], (out_channels,)),
        g_up=uni(ks[2], (out_channels,), 0.5, 1.5),
        be_up=nrm(ks[3], (out_channels,)),
        m_up=nrm(ks[4], (out_channels,)),
        v_up=uni(ks[5], (out_channels,), 0.5, 1.5),
        a_up=jnp.full((out_channels,), 0.25, jnp.float32),
        # NetConvBlock layer 0: 3x3 conv (out_ch + br_ch -> out_ch), padding=1
        w_cb=nrm(ks[6], (out_channels, C_cat, 3, 3)),
        b_cb=nrm(ks[7], (out_channels,)),
        g_cb=uni(ks[8], (out_channels,), 0.5, 1.5),
        be_cb=nrm(ks[9], (out_channels,)),
        m_cb=nrm(ks[10], (out_channels,)),
        v_cb=uni(ks[11], (out_channels,), 0.5, 1.5),
        a_cb=jnp.full((out_channels,), 0.25, jnp.float32),
        # out head: 1x1 conv (out_ch -> classes)
        w_out=nrm(ks[12], (classes, out_channels, 1, 1)),
        b_out=nrm(ks[13], (classes,)),
        g_out=uni(ks[14], (classes,), 0.5, 1.5),
        be_out=nrm(ks[15], (classes,)),
        m_out=nrm(ks[16], (classes,)),
        v_out=uni(ks[17], (classes,), 0.5, 1.5),
        a_out=jnp.full((classes,), 0.25, jnp.float32),
    )


def _ref_forward(x, bridge, p):
    """Independent pure-JAX reference using lax convolution primitives."""
    hp = jax.lax.Precision.HIGHEST

    def bn(t, g, b, m, v):
        s = (g / jnp.sqrt(v + _EPS))[None, :, None, None]
        return (t - m[None, :, None, None]) * s + b[None, :, None, None]

    def prelu(t, a):
        return jnp.where(t >= 0, t, a[None, :, None, None] * t)

    # ConvTranspose2d(k=2,s=2) == conv(lhs_dilation=2, pad=1) with flipped, IO-swapped kernel
    w_t = jnp.flip(p["w_up"], axis=(2, 3)).transpose(1, 0, 2, 3)   # (Cout, Cin, 2, 2)
    up = jax.lax.conv_general_dilated(
        x, w_t, window_strides=(1, 1), padding=((1, 1), (1, 1)),
        lhs_dilation=(2, 2), dimension_numbers=("NCHW", "OIHW", "NCHW"),
        precision=hp) + p["b_up"][None, :, None, None]
    up = prelu(bn(up, p["g_up"], p["be_up"], p["m_up"], p["v_up"]), p["a_up"])

    cat = jnp.concatenate([up, bridge], axis=1)
    y = jax.lax.conv_general_dilated(
        cat, p["w_cb"], window_strides=(1, 1), padding=((1, 1), (1, 1)),
        dimension_numbers=("NCHW", "OIHW", "NCHW"),
        precision=hp) + p["b_cb"][None, :, None, None]
    y = prelu(bn(y, p["g_cb"], p["be_cb"], p["m_cb"], p["v_cb"]), p["a_cb"])
    y = y + up

    z = jax.lax.conv_general_dilated(
        y, p["w_out"], window_strides=(1, 1), padding=((0, 0), (0, 0)),
        dimension_numbers=("NCHW", "OIHW", "NCHW"),
        precision=hp) + p["b_out"][None, :, None, None]
    z = prelu(bn(z, p["g_out"], p["be_out"], p["m_out"], p["v_out"]), p["a_out"])
    return z


if __name__ == "__main__":
    key = jax.random.PRNGKey(0)
    k_x, k_b, k_p = jax.random.split(key, 3)

    N, C_in, C_br, C_out, classes = 2, 16, 8, 8, 4
    H = W = 16

    x = jax.random.normal(k_x, (N, C_in, H, W), dtype=jnp.float32)
    bridge = jax.random.normal(k_b, (N, C_br, 2 * H, 2 * W), dtype=jnp.float32)
    params = _init_params(k_p, C_in, C_br, C_out, classes)

    y = net_out_block_forward(x, bridge, params)
    y = jax.block_until_ready(y)
    assert y.shape == (N, classes, 2 * H, 2 * W)

    y_ref = _ref_forward(x, bridge, params)
    np.testing.assert_allclose(np.asarray(y), np.asarray(y_ref), rtol=1e-3, atol=1e-3)
    print("KERNEL_OK")
</pallas_src>

<mosaic_0001>
module attributes {stable_mosaic.version = 11 : i64} {
  func.func @_up_kernel(%arg0: i32, %arg1: memref<1x16x256xf32, #tpu.memory_space<vmem>>, %arg2: memref<32x16xf32, #tpu.memory_space<vmem>>, %arg3: memref<32x1xf32, #tpu.memory_space<vmem>>, %arg4: memref<32x1xf32, #tpu.memory_space<vmem>>, %arg5: memref<32x1xf32, #tpu.memory_space<vmem>>, %arg6: memref<1x32x256xf32, #tpu.memory_space<vmem>>) attributes {dimension_semantics = [#tpu.dimension_semantics<parallel>], iteration_bounds = array<i64: 2>, scalar_prefetch = 0 : i64, scratch_operands = 0 : i64, tpu.core_type = #tpu.core_type<tc>, window_params = [{transform_indices = @transform_0, window_bounds = array<i64: 1, 16, 256>}, {pipeline_mode = #tpu.pipeline_mode<synchronous>, transform_indices = @transform_1, window_bounds = array<i64: 32, 16>}, {pipeline_mode = #tpu.pipeline_mode<synchronous>, transform_indices = @transform_2, window_bounds = array<i64: 32, 1>}, {pipeline_mode = #tpu.pipeline_mode<synchronous>, transform_indices = @transform_3, window_bounds = array<i64: 32, 1>}, {pipeline_mode = #tpu.pipeline_mode<synchronous>, transform_indices = @transform_4, window_bounds = array<i64: 32, 1>}, {transform_indices = @transform_5, window_bounds = array<i64: 1, 32, 256>}]} {
    %c0 = arith.constant 0 : index
    %c0_0 = arith.constant 0 : index
    %c0_1 = arith.constant 0 : index
    %0 = vector.load %arg1[%c0, %c0_0, %c0_1] : memref<1x16x256xf32, #tpu.memory_space<vmem>>, vector<1x16x256xf32>
    %1 = vector.shape_cast %0 : vector<1x16x256xf32> to vector<16x256xf32>
    %c0_2 = arith.constant 0 : index
    %c0_3 = arith.constant 0 : index
    %2 = vector.load %arg2[%c0_2, %c0_3] : memref<32x16xf32, #tpu.memory_space<vmem>>, vector<32x16xf32>
    %cst = arith.constant dense<0.000000e+00> : vector<32x256xf32>
    %3 = tpu.matmul %2, %1, %cst {dimension_numbers = #tpu.dot_dimension_numbers<[1], [0], [0], [1], [0, 0, 1, 1], [], []>} : vector<32x16xf32>, vector<16x256xf32>, vector<32x256xf32> -> vector<32x256xf32>
    %c0_4 = arith.constant 0 : index
    %c0_5 = arith.constant 0 : index
    %4 = vector.load %arg3[%c0_4, %c0_5] : memref<32x1xf32, #tpu.memory_space<vmem>>, vector<32x1xf32>
    %5 = vector.broadcast %4 : vector<32x1xf32> to vector<32x256xf32>
    %6 = arith.mulf %3, %5 : vector<32x256xf32>
    %c0_6 = arith.constant 0 : index
    %c0_7 = arith.constant 0 : index
    %7 = vector.load %arg4[%c0_6, %c0_7] : memref<32x1xf32, #tpu.memory_space<vmem>>, vector<32x1xf32>
    %8 = vector.broadcast %7 : vector<32x1xf32> to vector<32x256xf32>
    %9 = arith.addf %6, %8 : vector<32x256xf32>
    %cst_8 = arith.constant 0.000000e+00 : f32
    %10 = vector.broadcast %cst_8 : f32 to vector<32x256xf32>
    %11 = arith.cmpf oge, %9, %10 : vector<32x256xf32>
    %c0_9 = arith.constant 0 : index
    %c0_10 = arith.constant 0 : index
    %12 = vector.load %arg5[%c0_9, %c0_10] : memref<32x1xf32, #tpu.memory_space<vmem>>, vector<32x1xf32>
    %13 = vector.broadcast %12 : vector<32x1xf32> to vector<32x256xf32>
    %14 = arith.mulf %13, %9 : vector<32x256xf32>
    %15 = arith.select %11, %9, %14 : vector<32x256xi1>, vector<32x256xf32>
    %c0_11 = arith.constant 0 : index
    %c0_12 = arith.constant 0 : index
    %c0_13 = arith.constant 0 : index
    %16 = vector.load %arg6[%c0_11, %c0_12, %c0_13] : memref<1x32x256xf32, #tpu.memory_space<vmem>>, vector<1x32x256xf32>
    %17 = vector.shape_cast %16 : vector<1x32x256xf32> to vector<32x256xf32>
    %18 = vector.shape_cast %15 : vector<32x256xf32> to vector<1x32x256xf32>
    tpu.vector_store %arg6[%c0_11, %c0_12, %c0_13], %18 {strides = array<i32>} : memref<1x32x256xf32, #tpu.memory_space<vmem>>, vector<1x32x256xf32>,
    return
  }
  func.func @transform_0(%arg0: i32) -> (i32, i32, i32) {
    %c0_i32 = arith.constant 0 : i32
    %c0_i32_0 = arith.constant 0 : i32
    %c0_i32_1 = arith.constant 0 : i32
    return %arg0, %c0_i32, %c0_i32_0 : i32, i32, i32
  }
  func.func @transform_1(%arg0: i32) -> (i32, i32) {
    %c0_i32 = arith.constant 0 : i32
    %c0_i32_0 = arith.constant 0 : i32
    %c0_i32_1 = arith.constant 0 : i32
    return %c0_i32, %c0_i32_0 : i32, i32
  }
  func.func @transform_2(%arg0: i32) -> (i32, i32) {
    %c0_i32 = arith.constant 0 : i32
    %c0_i32_0 = arith.constant 0 : i32
    %c0_i32_1 = arith.constant 0 : i32
    return %c0_i32, %c0_i32_0 : i32, i32
  }
  func.func @transform_3(%arg0: i32) -> (i32, i32) {
    %c0_i32 = arith.constant 0 : i32
    %c0_i32_0 = arith.constant 0 : i32
    %c0_i32_1 = arith.constant 0 : i32
    return %c0_i32, %c0_i32_0 : i32, i32
  }
  func.func @transform_4(%arg0: i32) -> (i32, i32) {
    %c0_i32 = arith.constant 0 : i32
    %c0_i32_0 = arith.constant 0 : i32
    %c0_i32_1 = arith.constant 0 : i32
    return %c0_i32, %c0_i32_0 : i32, i32
  }
  func.func @transform_5(%arg0: i32) -> (i32, i32, i32) {
    %c0_i32 = arith.constant 0 : i32
    %c0_i32_0 = arith.constant 0 : i32
    %c0_i32_1 = arith.constant 0 : i32
    return %arg0, %c0_i32, %c0_i32_0 : i32, i32, i32
  }
}

</mosaic_0001>

<bundles_post_ra>
// kernel: tpu_custom_call.1
= control target key start
LH: loop header
LB: loop body
LE: loop exit
PB: predicated region body
PF: predicated region fallthrough
CT: control target
= control target key end

     0   :  { %10 = vsyncpa [#allocation3], 0  ;;  %s867_s0 = inlined_call_operand.vmem [shape: f32[2,16,256], index: 0, kind: input, shape index: {}]   ;;  %s868_s1 = inlined_call_operand.vmem [shape: f32[32,16], index: 1, kind: input, shape index: {}]   ;;  %s869_s2 = inlined_call_operand.vmem [shape: f32[32,1], index: 2, kind: input, shape index: {}]   ;;  %s870_s3 = inlined_call_operand.vmem [shape: f32[32,1], index: 3, kind: input, shape index: {}]   ;;  %s871_s4 = inlined_call_operand.vmem [shape: f32[32,1], index: 4, kind: input, shape index: {}]   ;;  %s872_s5 = inlined_call_operand.hbm [shape: f32[2,32,256], index: 5, kind: output, shape index: {}]  }
   0x1   :  { %12 = vsyncpa [#allocation3 + $0x1], 0  ;;  %s697_s18 = smov 0   ;;  %s699_s19 = smov 0  }
   0x2   :  { %s701_s20 = smov 0   ;;  %s703_s21 = smov 0  }
   0x3 LB: > { %s718_s22 = sadd.s32 4294967295, %s660_s21   ;;  %s529_s23 = sadd.s32 4294967294, %s660_s21   ;;  %s660_s21 = sphi %s703_s21, %s878_s21   ;;  %s656_s20 = sphi %s701_s20, %s877_s20   ;;  %s652_s19 = sphi %s699_s19, %s876_s19   ;;  %s648_s18 = sphi %s697_s18, %s875_s18  }
   0x4   : > { %s722_s24 = sadd.s32 1, %s660_s21   ;;  %s135_s25 = sadd.s32 1, %s656_s20 }
   0x5   : > { %s132_s26 = ssub.s32 %s660_s21, %s722_s24  ;;  %p145_p0 = scmp.ne.s32.totalorder %s656_s20, %s652_s19 }
   0x6   : > { %p133_p1 = scmp.eq.s32.totalorder %s132_s26, 0  ;;  %p146_p2 = scmp.eq.s32.totalorder %s718_s22, 1 }
   0x7   : > { %p151_p3 = scmp.ne.s32.totalorder %s652_s19, %s648_s18  ;;  %p152_p4 = scmp.eq.s32.totalorder %s529_s23, 1 }
   0x8   : > { %s733_s27 = scalar_select %p133_p1, %s656_s20, %s135_s25  }
   0x9   : > { %p735_p5 = por %p146_p2, %p145_p0  ;;  %p739_p6 = por %p152_p4, %p151_p3 }
   0xa   : > { %p532_p7 = scmp.ge.s32.totalorder %s660_s21, 1  ;;  %p190_p8 = scmp.lt.s32.totalorder %s660_s21, 3 }
   0xc   : > { %p191_p9 = pnand %p532_p7, %p190_p8 }
   0xd   : > { %p218_p10 = scmp.lt.s32.totalorder (!%p191_p9), %s718_s22, 1  ;;  %v662_v0 = vmov (!%p191_p9), 0.0   ;;  %v335_v1 = vld [vmem:[%s869_s2 + $0x10] sm:$0xff] (!%p191_p9)  ;;  %v333_v2 = vld [vmem:[%s869_s2] sm:$0xff] (!%p191_p9)  ;;  %v663_v3 = vmov (!%p191_p9), 0   ;;  %v336_v4 = vld [vmem:[%s869_s2 + $0x18] sm:$0xff] (!%p191_p9) }
   0xe   : > { %194 = sbr.rel (%p191_p9) target bundleno = 274 (0x112), region = 40  ;;  %308 = vmatprep.mubr.f32.mxu0 (!%p191_p9), %v662_v0  ;;  %320 = vmatprep.mubr.f32.mxu1 (!%p191_p9), %v662_v0  ;;  %v334_v5 = vld [vmem:[%s869_s2 + $0x8] sm:$0xff] (!%p191_p9)  ;;  %v365_v13 = vld [vmem:[%s870_s3] sm:$0xff] (!%p191_p9)  ;;  %vm231_vm0 = vcmask (!%p191_p9), 130048   ;;  %v229_v15 = vld [vmem:[%s868_s1 + $0x10] sm:$0xff] (!%p191_p9)  ;;  %s546_s13 = sshll.u32 (!%p191_p9), %s718_s22, 10 }
   0xf   : > { %597 = vset.pattern.permute.xlu1 (!%p191_p9), %v663_v3  ;;  %596 = vset.pattern.permute.xlu0 (!%p191_p9), %v663_v3  ;;  %v366_v12 = vld [vmem:[%s870_s3 + $0x8] sm:$0xff] (!%p191_p9)  ;;  %v227_v14 = vld [vmem:[%s868_s1] sm:$0xff] (!%p191_p9)  ;;  %v368_v16 = vld [vmem:[%s870_s3 + $0x18] sm:$0xff] (!%p191_p9)  ;;  %s816_s16 = scalar_lea.hbm (!%p191_p9), %s872_s5, %s546_s13  ;;  %s664_s25 = smov (!%p191_p9), [#allocation2]  }
  0x10   : > { %349 = vperm.xlu1 (!%p191_p9), %597, %v335_v1   ;;  %339 = vperm.xlu0 (!%p191_p9), %596, %v333_v2   ;;  %v367_v17 = vld [vmem:[%s870_s3 + $0x10] sm:$0xff] (!%p191_p9)  ;;  %v228_v18 = vld [vmem:[%s868_s1 + $0x8] sm:$0xff] (!%p191_p9)  ;;  %v230_v19 = vld [vmem:[%s868_s1 + $0x18] sm:$0xff] (!%p191_p9)  ;;  %s602_s26 = sshll.u32 (!%p191_p9), %s664_s25, 4  ;;  %s603_s26 = int_to_ptr.vmem [resolvable:$false] %s602_s26 }
  0x11   : > { %v406_v20 = vld [vmem:[%s871_s4 + $0x8] sm:$0xff] (!%p191_p9)  ;;  %v405_v21 = vld [vmem:[%s871_s4] sm:$0xff] (!%p191_p9)  ;;  %v408_v22 = vld [vmem:[%s871_s4 + $0x18] sm:$0xff] (!%p191_p9)  ;;  %s604_s30 = scalar_lea.vmem (!%p191_p9), %s603_s26, 2048 }
  0x12   : > { %v407_v23 = vld [vmem:[%s871_s4 + $0x10] sm:$0xff] (!%p191_p9) }
  0x14   : > { %354 = vperm.xlu1 (!%p191_p9), %597, %v336_v4   ;;  %344 = vperm.xlu0 (!%p191_p9), %596, %v334_v5  }
  0x15   : > { %s219_s9 = scalar_select %p218_p10, %s718_s22, 1 }
  0x17   : > { %s545_s10 = sshll.u32 %s219_s9, 5 }
  0x18   : > { %s222_s17 = scalar_lea.vmem %s867_s0, %s545_s10  ;;  %376 = vperm.xlu1 %597, %v366_v12   ;;  %371 = vperm.xlu0 %596, %v365_v13   ;;  %s215_s10 = sand.u32 1, %s652_s19  }
  0x19   : > { %v224_v6 = vld [vmem:[%s222_s17 + $0x8] sm:$0xff]  ;;  %v226_v7 = vld [vmem:[%s222_s17 + $0x18] sm:$0xff]  ;;  %v223_v8 = vld [vmem:[%s222_s17] sm:$0xff]  ;;  %s533_s11 = sshll.u32 %s215_s10, 6 }
  0x1a   : > { %v547_v9 = vpack.c.bf16 %v226_v7, %v224_v6  ;;  %v225_v10 = vld [vmem:[%s222_s17 + $0x10] sm:$0xff]  ;;  %s805_s12 = scalar_lea.vmem [#allocation2], %s533_s11  ;;  %s826_s17 = scalar_lea.sflag [#allocation3], %s215_s10 }
  0x1b   : > { %v549_v11 = vpack.c.bf16 %v225_v10, %v223_v8  ;;  %s467_s14 = sshll.u32 %s805_s12, 4  ;;  %s818_s14 = int_to_ptr.vmem [resolvable:$true] %s467_s14 }
  0x1c   : > { %548 = vmatprep.subr.bf16.mxu0 %v547_v9  ;;  %551 = vmatprep.subr.bf16.mxu1 %v547_v9  ;;  %s598_s23 = scalar_lea.vmem %s818_s14, 1024  ;;  %p605_p0 = scmp.lt.s32.totalorder %s818_s14, %s603_s26 }
  0x1d   : > { %550 = vmatpush1.bf16.msra.mxu0 %v549_v11  ;;  %552 = vmatpush1.bf16.msra.mxu1 %v549_v11  ;;  %p599_p11 = scmp.ne.s32.totalorder %s818_s14, %s598_s23  ;;  %p606_p1 = scmp.lt.s32.totalorder %s604_s30, %s598_s23 }
  0x1e   : > { %386 = vperm.xlu1 %597, %v368_v16   ;;  %381 = vperm.xlu0 %596, %v367_v17  }
  0x1f   : > { %p600_p12 = pnand %p599_p11, %p735_p5  ;;  %p607_p2 = por %p606_p1, %p605_p0 }
  0x20   : > { %536 = vmatmul.mubr.msk.f32.vlgmr.msra.gmra.mrb[0].mxu0 %vm231_vm0, %v227_v14  ;;  %538 = vmatmul.mubr.msk.f32.vlgmr.msra.gmra.mrb[0].mxu1 %vm231_vm0, %v229_v15 }
  0x21   : > { %314 = vmatprep.mubr.f32.mxu0 %v662_v0  ;;  %326 = vmatprep.mubr.f32.mxu1 %v662_v0  ;;  %p601_p13 = pneg %p600_p12 }
  0x22   : > { %416 = vperm.xlu1 %597, %v406_v20   ;;  %411 = vperm.xlu0 %596, %v405_v21  }
  0x23   : > { %p608_p3 = pnand %p607_p2, %p601_p13 }
  0x24   : > { %537 = vmatmul.mubr.msk.f32.gmra.mrb[2].mxu0 %vm231_vm0, %v228_v18  ;;  %539 = vmatmul.mubr.msk.f32.gmra.mrb[2].mxu1 %vm231_vm0, %v230_v19 }
  0x26   : > { %426 = vperm.xlu1 %597, %v408_v22   ;;  %421 = vperm.xlu0 %596, %v407_v23  }
  0x8f   : > { %v340_v24 = vpop.permute.xlu0 %339  ;;  %v350_v25 = vpop.permute.xlu1 %349 }
  0x93   : > { %v345_v26 = vpop.permute.xlu0 %344  ;;  %v355_v27 = vpop.permute.xlu1 %354 }
  0x97   : > { %v372_v28 = vpop.permute.xlu0 %371  ;;  %v377_v29 = vpop.permute.xlu1 %376 }
  0x9d   : > { %v382_v30 = vpop.permute.xlu0 %381  ;;  %v387_v31 = vpop.permute.xlu1 %386 }
  0xa1   : > { %v412_v32 = vpop.permute.xlu0 %411  ;;  %v417_v41 = vpop.permute.xlu1 %416 }
  0xa5   : > { %v422_v42 = vpop.permute.xlu0 %421  ;;  %v427_v1 = vpop.permute.xlu1 %426 }
  0xf3   : > { %v310_v33 = vpop.f32.mrb[0].mxu0  ;;  %v322_v34 = vpop.f32.mrb[0].mxu1 }
  0xf4   : > { %v357_v35 = vmul.f32 %v340_v24, %v310_v33  ;;  %v361_v36 = vmul.f32 %v350_v25, %v322_v34  ;;  %v312_v37 = vpop.f32.mrb[1].mxu0  ;;  %v324_v38 = vpop.f32.mrb[1].mxu1 }
  0xf5   : > { %v358_v39 = vmul.f32 %v340_v24, %v312_v37  ;;  %v362_v40 = vmul.f32 %v350_v25, %v324_v38 }
  0xf6   : > { %v389_v43 = vadd.f32 %v372_v28, %v357_v35  ;;  %v393_v44 = vadd.f32 %v382_v30, %v361_v36 }
  0xf7   : > { %v390_v45 = vadd.f32 %v372_v28, %v358_v39  ;;  %v394_v46 = vadd.f32 %v382_v30, %v362_v40  ;;  %v316_v47 = vpop.f32.mrb[2].mxu0  ;;  %v328_v48 = vpop.f32.mrb[2].mxu1 }
  0xf8   : > { %vm397_vm1 = vcmp.ge.f32.partialorder %v389_v43, 0.0  ;;  %v429_v49 = vmul.f32 %v412_v32, %v389_v43  ;;  %vm401_vm2 = vcmp.ge.f32.partialorder %v393_v44, 0.0  ;;  %v433_v50 = vmul.f32 %v422_v42, %v393_v44  ;;  %v318_v51 = vpop.f32.mrb[3].mxu0  ;;  %v330_v52 = vpop.f32.mrb[3].mxu1 }
  0xf9   : > { %vm398_vm3 = vcmp.ge.f32.partialorder %v390_v45, 0.0  ;;  %v430_v53 = vmul.f32 %v412_v32, %v390_v45  ;;  %vm402_vm4 = vcmp.ge.f32.partialorder %v394_v46, 0.0  ;;  %v434_v54 = vmul.f32 %v422_v42, %v394_v46 }
  0xfa   : > { %v437_v55 = vsel %vm397_vm1, %v389_v43, %v429_v49  ;;  %v441_v56 = vsel %vm401_vm2, %v393_v44, %v433_v50  ;;  %v359_v57 = vmul.f32 %v345_v26, %v316_v47  ;;  %v363_v58 = vmul.f32 %v355_v27, %v328_v48 }
  0xfb   : > { %445 = vst [vmem:[%s805_s12] sm:$0xff] %v437_v55  ;;  %449 = vst [vmem:[%s805_s12 + $0x20] sm:$0xff] %v441_v56  ;;  %v438_v59 = vsel %vm398_vm3, %v390_v45, %v430_v53  ;;  %v442_v60 = vsel %vm402_vm4, %v394_v46, %v434_v54  ;;  %v360_v61 = vmul.f32 %v345_v26, %v318_v51 }
  0xfc   : > { %v364_v62 = vmul.f32 %v355_v27, %v330_v52  ;;  %446 = vst [vmem:[%s805_s12 + $0x8] sm:$0xff] %v438_v59  ;;  %450 = vst [vmem:[%s805_s12 + $0x28] sm:$0xff] %v442_v60  ;;  %v391_v63 = vadd.f32 %v377_v29, %v359_v57  ;;  %v395_v0 = vadd.f32 %v387_v31, %v363_v58 }
  0xfd   : > { %v392_v2 = vadd.f32 %v377_v29, %v360_v61 }
  0xfe   : > { %v396_v3 = vadd.f32 %v387_v31, %v364_v62  ;;  %vm399_vm5 = vcmp.ge.f32.partialorder %v391_v63, 0.0  ;;  %v431_v4 = vmul.f32 %v417_v41, %v391_v63  ;;  %vm403_vm6 = vcmp.ge.f32.partialorder %v395_v0, 0.0 }
  0xff   : > { %v435_v5 = vmul.f32 %v427_v1, %v395_v0  ;;  %vm400_vm7 = vcmp.ge.f32.partialorder %v392_v2, 0.0  ;;  %v432_v6 = vmul.f32 %v417_v41, %v392_v2 }
 0x100   : > { %vm404_vm8 = vcmp.ge.f32.partialorder %v396_v3, 0.0  ;;  %v436_v7 = vmul.f32 %v427_v1, %v396_v3  ;;  %v439_v8 = vsel %vm399_vm5, %v391_v63, %v431_v4 }
 0x101   : > { %v443_v9 = vsel %vm403_vm6, %v395_v0, %v435_v5  ;;  %447 = vst [vmem:[%s805_s12 + $0x10] sm:$0xff] %v439_v8  ;;  %v440_v10 = vsel %vm400_vm7, %v392_v2, %v432_v6 }
 0x102   : > { %451 = vst [vmem:[%s805_s12 + $0x30] sm:$0xff] %v443_v9  ;;  %v444_v11 = vsel %vm404_vm8, %v396_v3, %v436_v7  ;;  %448 = vst [vmem:[%s805_s12 + $0x18] sm:$0xff] %v440_v10 }
 0x103   : > { %452 = vst [vmem:[%s805_s12 + $0x38] sm:$0xff] %v444_v11 }
 0x104   : > { %611 = shalt.err (!%p608_p3)
}
 0x105   : > { %s612_s6 = scalar_lea.hbm %s816_s16, 1024  ;;  %s616_s9 = scalar_lea.hbm %s872_s5, 2048 }
 0x106   : > { %p613_p4 = scmp.ne.s32.totalorder %s816_s16, %s612_s6  ;;  %p617_p9 = scmp.lt.u32.totalorder %s816_s16, %s872_s5 }
 0x107   : > { %p618_p10 = scmp.lt.u32.totalorder %s616_s9, %s612_s6  ;;  %p620_p12 = scmp.lt.u32.totalorder %s612_s6, %s816_s16 }
 0x108   : > { %p614_p7 = pnand %p613_p4, %p735_p5 }
 0x109   : > { %p619_p11 = por %p618_p10, %p617_p9 }
 0x10a   : > { %p615_p8 = pneg %p614_p7 }
 0x10b   : > { %p621_p13 = por %p620_p12, %p619_p11 }
 0x10d   : > { %p622_p0 = pnand %p621_p13, %p615_p8 }
 0x10f   : > { %625 = shalt.err (!%p622_p0)
}
 0x110   : > { %s665_s12 = smov 256   ;;  %s666_s13 = smov 16  }
 0x111   : > { %553 = dma.vmem_to_hbm [thread:$0]  (%p735_p5), %s818_s14, 1024, %s816_s16, %s826_s17, %s665_s12, %s665_s12, %s666_s13  }
 0x112 PF: > { %p559_p1 = scmp.ge.s32.totalorder %s660_s21, 2  ;;  %s482_s15 = sand.u32 1, %s648_s18  }
 0x113   : > { %s483_s22 = scalar_lea.sflag [#allocation3], %s482_s15 }
 0x114   : > { %p556_p2 = pnand %p559_p1, %p739_p6 }
 0x116   : > { %643 = dma.done.wait (!%p556_p2), %s483_s22, 1024  }
 0x117   : > { %645 = vsyncadd (!%p556_p2), %s483_s22, 4294966272  ;;  %p15_p3 = scmp.ge.s32.totalorder %s722_s24, 4   ;;  %s875_s18 = smov %s652_s19 }
 0x118   : > { %s876_s19 = smov %s656_s20  ;;  %s877_s20 = smov %s733_s27 }
 0x119   : > { %s878_s21 = smov %s722_s24  ;;  %17 = sbr.rel (!%p15_p3) target bundleno = 3 (0x3), region = 75 }
 0x120   :  { %488 = vsyncpa [#allocation3], 1 }
 0x121   :  { %490 = vsyncpa [#allocation3 + $0x1], 1 }

</bundles_post_ra>
